<compile_context>
chip_gen: v7x
topology: tpu7x:2x2x1
jax: 0.10.0
libtpu: 0.0.40
codegen_flags: <defaults>
</compile_context>

<pallas_src>
import functools
import math

import jax
import jax.numpy as jnp
from jax.experimental import pallas as pl
from jax.experimental.pallas import tpu as pltpu

CE_WEIGHT = 0.7
DICE_WEIGHT = 0.3
NUM_CLASSES = 4


def _divisors(n):
    ds = []
    i = 1
    while i * i <= n:
        if n % i == 0:
            ds.append(i)
            if i != n // i:
                ds.append(n // i)
        i += 1
    return sorted(ds)


def _choose_fold(dh, w):
    """Pick (k, w_pad): k | D*H and k*w_pad % 128 == 0.  Cost balances lane
    padding (w_pad/w) against sublane sparsity when D*H/k < 8."""
    best_key, best = None, None
    for k in _divisors(dh):
        m = 128 // math.gcd(k, 128)          # w_pad must be a multiple of m
        wp = ((w + m - 1) // m) * m
        s = dh // k
        cost = (wp / w) * max(1.0, 8.0 / s)
        key = (cost, wp, k)
        if best_key is None or key < best_key:
            best_key, best = key, (k, wp)
    return best


def _choose_tile(s, l, c, logit_itemsize, tgt_itemsize, block_bytes):
    """Near-maximal spatial tile TS under block_bytes.  TS is a multiple of the
    sublane tile of every block dtype (8/16/32 for 4/2/1-byte); TS need not
    divide S (cdiv grid + in-kernel row mask handles the tail)."""
    def sub(itemsize):
        return {1: 32, 2: 16}.get(itemsize, 8)
    align = max(sub(logit_itemsize), sub(tgt_itemsize))
    max_ts = block_bytes // (c * l * logit_itemsize)
    if max_ts >= s:
        return s
    ts = (max_ts // align) * align
    if ts == 0:
        ts = min(align, s)                   # tiny budget: soft-exceed the cap
    return ts


def _device_profile():
    """(block_bytes, vmem_limit_bytes, use_bf16_masks) per TPU generation."""
    try:
        kind = jax.devices()[0].device_kind.lower()
    except Exception:  # pragma: no cover
        kind = ""
    if "7x" in kind or "v7" in kind or "ironwood" in kind:
        return 8 << 20, 48 << 20, True       # 64 MiB physical VMEM
    if "v6" in kind or "trillium" in kind:
        return 12 << 20, 96 << 20, True
    if "v5 lite" in kind or "v5e" in kind or "v5litepod" in kind:
        return (7 << 19), 48 << 20, False    # 3.5 MiB block, no bf16 VPU
    return 4 << 20, None, False              # unknown: conservative defaults


def _combined_loss_kernel(o_ref, t_ref, out_ref, *acc_refs, num_classes,
                          s_valid, ts, ns_inner, w_pad, w_true,
                          need_row_mask, need_lane_mask, mask_dtype,
                          accumulate_tsum):
    """o_ref: (1, C, TS, L) logits; t_ref: (1, TS, L) int labels;
    out_ref: (1, 1, R, L) lane partials [ce_sum, intersection, pred_sum,
    (tgt_sum)] for one (batch, parallel-half); acc_refs: R x (1, L) f32."""
    p = pl.program_id(1)
    s = pl.program_id(2)

    ce_acc, inter_acc, psum_acc = acc_refs[0], acc_refs[1], acc_refs[2]
    tsum_acc = acc_refs[3] if accumulate_tsum else None

    @pl.when(s == 0)
    def _():
        for a in acc_refs:
            a[...] = jnp.zeros_like(a)

    t = t_ref[0]                                        # (TS, L) int
    shape = t.shape

    # Validity mask for padded tail rows / padded lanes (trace-time static).
    valid = None
    if need_row_mask:
        rows_left = s_valid - (p * ns_inner + s) * ts   # traced scalar
        row_ids = jax.lax.broadcasted_iota(jnp.int32, shape, 0)
        valid = row_ids < rows_left
    if need_lane_mask:
        lane_ids = jax.lax.broadcasted_iota(jnp.int32, shape, 1)
        lmask = (lane_ids % w_pad) < w_true
        valid = lmask if valid is None else (valid & lmask)

    # Unrolled (static) class loop: stable logsumexp, no (C, TS, L) cubes.
    m = o_ref[0, 0].astype(jnp.float32)
    for c in range(1, num_classes):
        m = jnp.maximum(m, o_ref[0, c].astype(jnp.float32))

    zero_f = jnp.zeros(shape, jnp.float32)
    zero_m = jnp.zeros(shape, mask_dtype)
    esum = zero_f
    sel = zero_f
    pred_sum = zero_m
    inter = zero_m
    tsum = zero_m if accumulate_tsum else None
    for c in range(num_classes):
        oc = o_ref[0, c].astype(jnp.float32)
        is_c = t == c
        pred_c = (oc > 0.5).astype(mask_dtype)          # threshold raw logits
        esum = esum + jnp.exp(oc - m)
        sel = sel + jnp.where(is_c, oc, zero_f)         # logit at target class
        pred_sum = pred_sum + pred_c
        inter = inter + jnp.where(is_c, pred_c, zero_m)
        if accumulate_tsum:
            tsum = tsum + is_c.astype(mask_dtype)

    ce = m + jnp.log(esum) - sel                        # per-position CE

    if valid is not None:
        ce = jnp.where(valid, ce, zero_f)
        vmask = valid.astype(mask_dtype)
        pred_sum = pred_sum * vmask
        inter = inter * vmask
        if accumulate_tsum:
            tsum = tsum * vmask

    ce_acc[...] += jnp.sum(ce, axis=0, keepdims=True)
    inter_acc[...] += jnp.sum(inter.astype(jnp.float32), axis=0, keepdims=True)
    psum_acc[...] += jnp.sum(pred_sum.astype(jnp.float32), axis=0, keepdims=True)
    if accumulate_tsum:
        tsum_acc[...] += jnp.sum(tsum.astype(jnp.float32), axis=0, keepdims=True)

    @pl.when(s == ns_inner - 1)
    def _():
        out_ref[0, 0, 0:1, :] = ce_acc[...]
        out_ref[0, 0, 1:2, :] = inter_acc[...]
        out_ref[0, 0, 2:3, :] = psum_acc[...]
        if accumulate_tsum:
            out_ref[0, 0, 3:4, :] = tsum_acc[...]


def combined_loss(outputs, targets, *, block_bytes=None, vmem_limit_bytes=None,
                  use_bf16_masks=None, assume_labels_in_range=True):
    """outputs: (N, C, D, H, W) float logits; targets: (N, D, H, W) ints
    (int32 / int8 / uint8 all accepted with no wrapper-side cast)."""
    prof_block, prof_vmem, prof_bf16 = _device_profile()
    if block_bytes is None:
        block_bytes = prof_block
    if vmem_limit_bytes is None:
        vmem_limit_bytes = prof_vmem
    if use_bf16_masks is None:
        use_bf16_masks = prof_bf16

    N, C, D, H, W = outputs.shape
    assert C == NUM_CLASSES
    dh = D * H

    k, w_pad = _choose_fold(dh, W)          # lane fold, L = k*w_pad % 128 == 0
    S = dh // k
    L = k * w_pad
    if w_pad == W:
        # Pure reshapes only: HBM dtypes preserved, no extra HBM pass.
        o3 = outputs.reshape(N, C, S, L)
        t3 = targets.reshape(N, S, L)
    else:
        # Awkward W: pad the lane axis once (masked in-kernel) rather than
        # running lane-sparse vld/vst on a sub-128 last dim.
        o3 = jnp.pad(outputs.reshape(N, C, S, k, W),
                     [(0, 0)] * 4 + [(0, w_pad - W)]).reshape(N, C, S, L)
        t3 = jnp.pad(targets.reshape(N, S, k, W),
                     [(0, 0)] * 3 + [(0, w_pad - W)]).reshape(N, S, L)

    TS = _choose_tile(S, L, C, o3.dtype.itemsize, t3.dtype.itemsize, block_bytes)
    ns_total = -(-S // TS)
    # Guarantee a second "parallel" axis for v7x megacore when N is odd.
    P = 2 if (N % 2 == 1 and ns_total % 2 == 0 and ns_total >= 2) else 1
    ns_inner = ns_total // P

    accumulate_tsum = not assume_labels_in_range
    R = 4 if accumulate_tsum else 3

    kernel = functools.partial(
        _combined_loss_kernel,
        num_classes=C, s_valid=S, ts=TS, ns_inner=ns_inner,
        w_pad=w_pad, w_true=W,
        need_row_mask=(ns_total * TS != S),
        need_lane_mask=(w_pad != W),
        mask_dtype=(jnp.bfloat16 if use_bf16_masks else jnp.float32),
        accumulate_tsum=accumulate_tsum)

    parts = pl.pallas_call(
        kernel,
        out_shape=jax.ShapeDtypeStruct((N, P, R, L), jnp.float32),
        grid_spec=pltpu.PrefetchScalarGridSpec(
            num_scalar_prefetch=0,
            grid=(N, P, ns_inner),
            in_specs=[
                pl.BlockSpec((1, C, TS, L),
                             lambda n, p, s: (n, 0, p * ns_inner + s, 0)),
                pl.BlockSpec((1, TS, L),
                             lambda n, p, s: (n, p * ns_inner + s, 0)),
            ],
            out_specs=pl.BlockSpec((1, 1, R, L), lambda n, p, s: (n, p, 0, 0)),
            scratch_shapes=[pltpu.VMEM((1, L), jnp.float32) for _ in range(R)],
        ),
        compiler_params=pltpu.CompilerParams(
            dimension_semantics=("parallel", "parallel", "arbitrary"),
            vmem_limit_bytes=vmem_limit_bytes),
        cost_estimate=pl.CostEstimate(
            flops=12 * N * C * S * L,
            transcendentals=(C + 1) * N * S * L,
            bytes_accessed=(o3.size * o3.dtype.itemsize
                            + t3.size * t3.dtype.itemsize
                            + N * P * R * L * 4)),
    )(o3, t3)

    # Tiny final combine in plain JAX.
    lane_tot = jnp.sum(parts, axis=1)                       # (N, R, L), over P
    ce_mean = jnp.sum(lane_tot[:, 0, :]) / float(N * D * H * W)

    def unfold(v):                                          # (N, L) -> (N, W)
        return jnp.sum(v.reshape(N, k, w_pad)[:, :, :W], axis=1)

    inter = unfold(lane_tot[:, 1, :])
    psum = unfold(lane_tot[:, 2, :])
    if accumulate_tsum:
        tsum = unfold(lane_tot[:, 3, :])
    else:
        # For in-range labels the one-hot sum over (C, D, H) is exactly D*H.
        tsum = jnp.full((N, W), float(D * H), jnp.float32)
    dice = 2.0 * inter / (psum + tsum + 1e-6)
    return CE_WEIGHT * ce_mean + DICE_WEIGHT * (1.0 - jnp.mean(dice))


def combined_loss_reference(outputs, targets):
    # Pure-JAX reference mirroring the PyTorch semantics.
    outputs = outputs.astype(jnp.float32)
    lse = jax.scipy.special.logsumexp(outputs, axis=1)                    # (N,D,H,W)
    sel = jnp.take_along_axis(
        outputs, targets[:, None].astype(jnp.int32), axis=1)[:, 0]        # (N,D,H,W)
    ce = jnp.mean(lse - sel)

    oh = jnp.transpose(
        jax.nn.one_hot(targets, NUM_CLASSES, dtype=jnp.float32),
        (0, 4, 1, 2, 3))                                                  # (N,C,D,H,W)
    pred = (outputs > 0.5).astype(jnp.float32)
    inter = jnp.sum(pred * oh, axis=(1, 2, 3))                            # (N, W)
    union = jnp.sum(pred, axis=(1, 2, 3)) + jnp.sum(oh, axis=(1, 2, 3))   # (N, W)
    dice = jnp.mean(2.0 * inter / (union + 1e-6))
    return CE_WEIGHT * ce + DICE_WEIGHT * (1.0 - dice)


if __name__ == "__main__":
    key = jax.random.PRNGKey(0)
    k1, k2, k3, k4, k5, k6 = jax.random.split(key, 6)
    C = NUM_CLASSES

    # Test 1: exact lane fold (H*W -> 128 lanes), single spatial tile.
    N, D, H, W = 2, 4, 8, 16
    outputs = jax.random.normal(k1, (N, C, D, H, W), dtype=jnp.float32)
    targets = jax.random.randint(k2, (N, D, H, W), 0, C, dtype=jnp.int32)
    loss = combined_loss(outputs, targets)
    jax.block_until_ready(loss)
    ref = combined_loss_reference(outputs, targets)
    assert jnp.allclose(loss, ref, rtol=1e-5, atol=1e-5), (loss, ref)

    # Test 2: odd batch + tiny block budget -> multi spatial tile (cdiv grid
    # with row masking) and the extra parallel split of the spatial axis.
    N2, D2, H2, W2 = 3, 12, 8, 16
    outputs2 = jax.random.normal(k3, (N2, C, D2, H2, W2), dtype=jnp.float32)
    targets2 = jax.random.randint(k4, (N2, D2, H2, W2), 0, C, dtype=jnp.int32)
    loss2 = combined_loss(outputs2, targets2, block_bytes=16 << 10)
    jax.block_until_ready(loss2)
    ref2 = combined_loss_reference(outputs2, targets2)
    assert jnp.allclose(loss2, ref2, rtol=1e-5, atol=1e-5), (loss2, ref2)

    # Test 3: awkward W=10 -> lane padding to Wp=16 with in-kernel lane mask;
    # also exercises the explicit target-sum accumulation path.
    N3, D3, H3, W3 = 2, 4, 8, 10
    outputs3 = jax.random.normal(k5, (N3, C, D3, H3, W3), dtype=jnp.float32)
    targets3 = jax.random.randint(k6, (N3, D3, H3, W3), 0, C, dtype=jnp.int32)
    loss3 = combined_loss(outputs3, targets3, assume_labels_in_range=False)
    jax.block_until_ready(loss3)
    ref3 = combined_loss_reference(outputs3, targets3)
    assert jnp.allclose(loss3, ref3, rtol=1e-5, atol=1e-5), (loss3, ref3)

    print("KERNEL_OK")
</pallas_src>

<mosaic_0001>
module attributes {stable_mosaic.version = 11 : i64} {
  func.func @_combined_loss_kernel(%arg0: i32, %arg1: i32, %arg2: i32, %arg3: memref<1x4x4x128xf32, #tpu.memory_space<vmem>>, %arg4: memref<1x4x128xi32, #tpu.memory_space<vmem>>, %arg5: memref<1x1x3x128xf32, #tpu.memory_space<vmem>>, %arg6: memref<1x128xf32, #tpu.memory_space<vmem>>, %arg7: memref<1x128xf32, #tpu.memory_space<vmem>>, %arg8: memref<1x128xf32, #tpu.memory_space<vmem>>) attributes {dimension_semantics = [#tpu.dimension_semantics<parallel>, #tpu.dimension_semantics<parallel>, #tpu.dimension_semantics<arbitrary>], iteration_bounds = array<i64: 2, 1, 1>, scalar_prefetch = 0 : i64, scratch_operands = 3 : i64, tpu.core_type = #tpu.core_type<tc>, window_params = [{transform_indices = @transform_0, window_bounds = array<i64: 1, 4, 4, 128>}, {transform_indices = @transform_1, window_bounds = array<i64: 1, 4, 128>}, {transform_indices = @transform_2, window_bounds = array<i64: 1, 1, 3, 128>}]} {
    %c0_i32 = arith.constant 0 : i32
    %0 = arith.cmpi eq, %arg2, %c0_i32 : i32
    %1 = arith.extui %0 : i1 to i32
    %c0_i32_0 = arith.constant 0 : i32
    %2 = arith.cmpi ne, %1, %c0_i32_0 : i32
    scf.if %2 {
      %cst_55 = arith.constant 0.000000e+00 : f32
      %103 = vector.broadcast %cst_55 : f32 to vector<1x128xf32>
      %c0_56 = arith.constant 0 : index
      %c0_57 = arith.constant 0 : index
      %104 = vector.load %arg6[%c0_56, %c0_57] : memref<1x128xf32, #tpu.memory_space<vmem>>, vector<1x128xf32>
      tpu.vector_store %arg6[%c0_56, %c0_57], %103 {strides = array<i32>} : memref<1x128xf32, #tpu.memory_space<vmem>>, vector<1x128xf32>,
      %cst_58 = arith.constant 0.000000e+00 : f32
      %105 = vector.broadcast %cst_58 : f32 to vector<1x128xf32>
      %c0_59 = arith.constant 0 : index
      %c0_60 = arith.constant 0 : index
      %106 = vector.load %arg7[%c0_59, %c0_60] : memref<1x128xf32, #tpu.memory_space<vmem>>, vector<1x128xf32>
      tpu.vector_store %arg7[%c0_59, %c0_60], %105 {strides = array<i32>} : memref<1x128xf32, #tpu.memory_space<vmem>>, vector<1x128xf32>,
      %cst_61 = arith.constant 0.000000e+00 : f32
      %107 = vector.broadcast %cst_61 : f32 to vector<1x128xf32>
      %c0_62 = arith.constant 0 : index
      %c0_63 = arith.constant 0 : index
      %108 = vector.load %arg8[%c0_62, %c0_63] : memref<1x128xf32, #tpu.memory_space<vmem>>, vector<1x128xf32>
      tpu.vector_store %arg8[%c0_62, %c0_63], %107 {strides = array<i32>} : memref<1x128xf32, #tpu.memory_space<vmem>>, vector<1x128xf32>,
    } else {
    }
    %c0 = arith.constant 0 : index
    %c0_1 = arith.constant 0 : index
    %c0_2 = arith.constant 0 : index
    %3 = vector.load %arg4[%c0, %c0_1, %c0_2] : memref<1x4x128xi32, #tpu.memory_space<vmem>>, vector<1x4x128xi32>
    %4 = vector.shape_cast %3 : vector<1x4x128xi32> to vector<4x128xi32>
    %c0_3 = arith.constant 0 : index
    %c0_4 = arith.constant 0 : index
    %c0_5 = arith.constant 0 : index
    %c0_6 = arith.constant 0 : index
    %5 = vector.load %arg3[%c0_3, %c0_4, %c0_5, %c0_6] : memref<1x4x4x128xf32, #tpu.memory_space<vmem>>, vector<1x1x4x128xf32>
    %6 = vector.shape_cast %5 : vector<1x1x4x128xf32> to vector<4x128xf32>
    %c0_7 = arith.constant 0 : index
    %c1 = arith.constant 1 : index
    %c0_8 = arith.constant 0 : index
    %c0_9 = arith.constant 0 : index
    %7 = vector.load %arg3[%c0_7, %c1, %c0_8, %c0_9] : memref<1x4x4x128xf32, #tpu.memory_space<vmem>>, vector<1x1x4x128xf32>
    %8 = vector.shape_cast %7 : vector<1x1x4x128xf32> to vector<4x128xf32>
    %9 = arith.maximumf %6, %8 : vector<4x128xf32>
    %c0_10 = arith.constant 0 : index
    %c2 = arith.constant 2 : index
    %c0_11 = arith.constant 0 : index
    %c0_12 = arith.constant 0 : index
    %10 = vector.load %arg3[%c0_10, %c2, %c0_11, %c0_12] : memref<1x4x4x128xf32, #tpu.memory_space<vmem>>, vector<1x1x4x128xf32>
    %11 = vector.shape_cast %10 : vector<1x1x4x128xf32> to vector<4x128xf32>
    %12 = arith.maximumf %9, %11 : vector<4x128xf32>
    %c0_13 = arith.constant 0 : index
    %c3 = arith.constant 3 : index
    %c0_14 = arith.constant 0 : index
    %c0_15 = arith.constant 0 : index
    %13 = vector.load %arg3[%c0_13, %c3, %c0_14, %c0_15] : memref<1x4x4x128xf32, #tpu.memory_space<vmem>>, vector<1x1x4x128xf32>
    %14 = vector.shape_cast %13 : vector<1x1x4x128xf32> to vector<4x128xf32>
    %15 = arith.maximumf %12, %14 : vector<4x128xf32>
    %cst = arith.constant 0.000000e+00 : f32
    %16 = vector.broadcast %cst : f32 to vector<4x128xf32>
    %cst_16 = arith.constant 0.000000e+00 : f32
    %17 = vector.broadcast %cst_16 : f32 to vector<4x128xf32>
    %c0_17 = arith.constant 0 : index
    %c0_18 = arith.constant 0 : index
    %c0_19 = arith.constant 0 : index
    %c0_20 = arith.constant 0 : index
    %18 = vector.load %arg3[%c0_17, %c0_18, %c0_19, %c0_20] : memref<1x4x4x128xf32, #tpu.memory_space<vmem>>, vector<1x1x4x128xf32>
    %19 = vector.shape_cast %18 : vector<1x1x4x128xf32> to vector<4x128xf32>
    %c0_i32_21 = arith.constant 0 : i32
    %20 = vector.broadcast %c0_i32_21 : i32 to vector<4x128xi32>
    %21 = arith.cmpi eq, %4, %20 : vector<4x128xi32>
    %cst_22 = arith.constant 5.000000e-01 : f32
    %22 = vector.broadcast %cst_22 : f32 to vector<4x128xf32>
    %23 = arith.cmpf ogt, %19, %22 : vector<4x128xf32>
    %24 = arith.extui %23 : vector<4x128xi1> to vector<4x128xi32>
    %25 = arith.sitofp %24 : vector<4x128xi32> to vector<4x128xf32>
    %26 = arith.subf %19, %15 : vector<4x128xf32>
    %27 = math.exp %26 : vector<4x128xf32>
    %28 = arith.addf %16, %27 : vector<4x128xf32>
    %29 = arith.select %21, %19, %16 : vector<4x128xi1>, vector<4x128xf32>
    %30 = arith.addf %16, %29 : vector<4x128xf32>
    %31 = arith.addf %17, %25 : vector<4x128xf32>
    %32 = arith.select %21, %25, %17 : vector<4x128xi1>, vector<4x128xf32>
    %33 = arith.addf %17, %32 : vector<4x128xf32>
    %c0_23 = arith.constant 0 : index
    %c1_24 = arith.constant 1 : index
    %c0_25 = arith.constant 0 : index
    %c0_26 = arith.constant 0 : index
    %34 = vector.load %arg3[%c0_23, %c1_24, %c0_25, %c0_26] : memref<1x4x4x128xf32, #tpu.memory_space<vmem>>, vector<1x1x4x128xf32>
    %35 = vector.shape_cast %34 : vector<1x1x4x128xf32> to vector<4x128xf32>
    %c1_i32 = arith.constant 1 : i32
    %36 = vector.broadcast %c1_i32 : i32 to vector<4x128xi32>
    %37 = arith.cmpi eq, %4, %36 : vector<4x128xi32>
    %cst_27 = arith.constant 5.000000e-01 : f32
    %38 = vector.broadcast %cst_27 : f32 to vector<4x128xf32>
    %39 = arith.cmpf ogt, %35, %38 : vector<4x128xf32>
    %40 = arith.extui %39 : vector<4x128xi1> to vector<4x128xi32>
    %41 = arith.sitofp %40 : vector<4x128xi32> to vector<4x128xf32>
    %42 = arith.subf %35, %15 : vector<4x128xf32>
    %43 = math.exp %42 : vector<4x128xf32>
    %44 = arith.addf %28, %43 : vector<4x128xf32>
    %45 = arith.select %37, %35, %16 : vector<4x128xi1>, vector<4x128xf32>
    %46 = arith.addf %30, %45 : vector<4x128xf32>
    %47 = arith.addf %31, %41 : vector<4x128xf32>
    %48 = arith.select %37, %41, %17 : vector<4x128xi1>, vector<4x128xf32>
    %49 = arith.addf %33, %48 : vector<4x128xf32>
    %c0_28 = arith.constant 0 : index
    %c2_29 = arith.constant 2 : index
    %c0_30 = arith.constant 0 : index
    %c0_31 = arith.constant 0 : index
    %50 = vector.load %arg3[%c0_28, %c2_29, %c0_30, %c0_31] : memref<1x4x4x128xf32, #tpu.memory_space<vmem>>, vector<1x1x4x128xf32>
    %51 = vector.shape_cast %50 : vector<1x1x4x128xf32> to vector<4x128xf32>
    %c2_i32 = arith.constant 2 : i32
    %52 = vector.broadcast %c2_i32 : i32 to vector<4x128xi32>
    %53 = arith.cmpi eq, %4, %52 : vector<4x128xi32>
    %cst_32 = arith.constant 5.000000e-01 : f32
    %54 = vector.broadcast %cst_32 : f32 to vector<4x128xf32>
    %55 = arith.cmpf ogt, %51, %54 : vector<4x128xf32>
    %56 = arith.extui %55 : vector<4x128xi1> to vector<4x128xi32>
    %57 = arith.sitofp %56 : vector<4x128xi32> to vector<4x128xf32>
    %58 = arith.subf %51, %15 : vector<4x128xf32>
    %59 = math.exp %58 : vector<4x128xf32>
    %60 = arith.addf %44, %59 : vector<4x128xf32>
    %61 = arith.select %53, %51, %16 : vector<4x128xi1>, vector<4x128xf32>
    %62 = arith.addf %46, %61 : vector<4x128xf32>
    %63 = arith.addf %47, %57 : vector<4x128xf32>
    %64 = arith.select %53, %57, %17 : vector<4x128xi1>, vector<4x128xf32>
    %65 = arith.addf %49, %64 : vector<4x128xf32>
    %c0_33 = arith.constant 0 : index
    %c3_34 = arith.constant 3 : index
    %c0_35 = arith.constant 0 : index
    %c0_36 = arith.constant 0 : index
    %66 = vector.load %arg3[%c0_33, %c3_34, %c0_35, %c0_36] : memref<1x4x4x128xf32, #tpu.memory_space<vmem>>, vector<1x1x4x128xf32>
    %67 = vector.shape_cast %66 : vector<1x1x4x128xf32> to vector<4x128xf32>
    %c3_i32 = arith.constant 3 : i32
    %68 = vector.broadcast %c3_i32 : i32 to vector<4x128xi32>
    %69 = arith.cmpi eq, %4, %68 : vector<4x128xi32>
    %cst_37 = arith.constant 5.000000e-01 : f32
    %70 = vector.broadcast %cst_37 : f32 to vector<4x128xf32>
    %71 = arith.cmpf ogt, %67, %70 : vector<4x128xf32>
    %72 = arith.extui %71 : vector<4x128xi1> to vector<4x128xi32>
    %73 = arith.sitofp %72 : vector<4x128xi32> to vector<4x128xf32>
    %74 = arith.subf %67, %15 : vector<4x128xf32>
    %75 = math.exp %74 : vector<4x128xf32>
    %76 = arith.addf %60, %75 : vector<4x128xf32>
    %77 = arith.select %69, %67, %16 : vector<4x128xi1>, vector<4x128xf32>
    %78 = arith.addf %62, %77 : vector<4x128xf32>
    %79 = arith.addf %63, %73 : vector<4x128xf32>
    %80 = arith.select %69, %73, %17 : vector<4x128xi1>, vector<4x128xf32>
    %81 = arith.addf %65, %80 : vector<4x128xf32>
    %82 = math.log %76 : vector<4x128xf32>
    %83 = arith.addf %15, %82 : vector<4x128xf32>
    %84 = arith.subf %83, %78 : vector<4x128xf32>
    %c0_38 = arith.constant 0 : index
    %c0_39 = arith.constant 0 : index
    %85 = vector.load %arg6[%c0_38, %c0_39] : memref<1x128xf32, #tpu.memory_space<vmem>>, vector<1x128xf32>
    %cst_40 = arith.constant dense<0.000000e+00> : vector<128xf32>
    %86 = vector.multi_reduction <add>, %84, %cst_40 [0] : vector<4x128xf32> to vector<128xf32>
    %87 = vector.shape_cast %86 : vector<128xf32> to vector<1x128xf32>
    %88 = arith.addf %85, %87 : vector<1x128xf32>
    %c0_41 = arith.constant 0 : index
    %c0_42 = arith.constant 0 : index
    %89 = vector.load %arg6[%c0_41, %c0_42] : memref<1x128xf32, #tpu.memory_space<vmem>>, vector<1x128xf32>
    tpu.vector_store %arg6[%c0_41, %c0_42], %88 {strides = array<i32>} : memref<1x128xf32, #tpu.memory_space<vmem>>, vector<1x128xf32>,
    %c0_43 = arith.constant 0 : index
    %c0_44 = arith.constant 0 : index
    %90 = vector.load %arg7[%c0_43, %c0_44] : memref<1x128xf32, #tpu.memory_space<vmem>>, vector<1x128xf32>
    %cst_45 = arith.constant dense<0.000000e+00> : vector<128xf32>
    %91 = vector.multi_reduction <add>, %81, %cst_45 [0] : vector<4x128xf32> to vector<128xf32>
    %92 = vector.shape_cast %91 : vector<128xf32> to vector<1x128xf32>
    %93 = arith.addf %90, %92 : vector<1x128xf32>
    %c0_46 = arith.constant 0 : index
    %c0_47 = arith.constant 0 : index
    %94 = vector.load %arg7[%c0_46, %c0_47] : memref<1x128xf32, #tpu.memory_space<vmem>>, vector<1x128xf32>
    tpu.vector_store %arg7[%c0_46, %c0_47], %93 {strides = array<i32>} : memref<1x128xf32, #tpu.memory_space<vmem>>, vector<1x128xf32>,
    %c0_48 = arith.constant 0 : index
    %c0_49 = arith.constant 0 : index
    %95 = vector.load %arg8[%c0_48, %c0_49] : memref<1x128xf32, #tpu.memory_space<vmem>>, vector<1x128xf32>
    %cst_50 = arith.constant dense<0.000000e+00> : vector<128xf32>
    %96 = vector.multi_reduction <add>, %79, %cst_50 [0] : vector<4x128xf32> to vector<128xf32>
    %97 = vector.shape_cast %96 : vector<128xf32> to vector<1x128xf32>
    %98 = arith.addf %95, %97 : vector<1x128xf32>
    %c0_51 = arith.constant 0 : index
    %c0_52 = arith.constant 0 : index
    %99 = vector.load %arg8[%c0_51, %c0_52] : memref<1x128xf32, #tpu.memory_space<vmem>>, vector<1x128xf32>
    tpu.vector_store %arg8[%c0_51, %c0_52], %98 {strides = array<i32>} : memref<1x128xf32, #tpu.memory_space<vmem>>, vector<1x128xf32>,
    %c0_i32_53 = arith.constant 0 : i32
    %100 = arith.cmpi eq, %arg2, %c0_i32_53 : i32
    %101 = arith.extui %100 : i1 to i32
    %c0_i32_54 = arith.constant 0 : i32
    %102 = arith.cmpi ne, %101, %c0_i32_54 : i32
    scf.if %102 {
      %c0_55 = arith.constant 0 : index
      %c0_56 = arith.constant 0 : index
      %103 = vector.load %arg6[%c0_55, %c0_56] : memref<1x128xf32, #tpu.memory_space<vmem>>, vector<1x128xf32>
      %c0_57 = arith.constant 0 : index
      %c0_58 = arith.constant 0 : index
      %c0_59 = arith.constant 0 : index
      %c0_60 = arith.constant 0 : index
      %104 = vector.load %arg5[%c0_57, %c0_58, %c0_59, %c0_60] : memref<1x1x3x128xf32, #tpu.memory_space<vmem>>, vector<1x1x1x128xf32>
      %105 = vector.shape_cast %104 : vector<1x1x1x128xf32> to vector<1x128xf32>
      %106 = vector.shape_cast %103 : vector<1x128xf32> to vector<1x1x1x128xf32>
      tpu.vector_store %arg5[%c0_57, %c0_58, %c0_59, %c0_60], %106 {strides = array<i32>} : memref<1x1x3x128xf32, #tpu.memory_space<vmem>>, vector<1x1x1x128xf32>,
      %c0_61 = arith.constant 0 : index
      %c0_62 = arith.constant 0 : index
      %107 = vector.load %arg7[%c0_61, %c0_62] : memref<1x128xf32, #tpu.memory_space<vmem>>, vector<1x128xf32>
      %c0_63 = arith.constant 0 : index
      %c0_64 = arith.constant 0 : index
      %c1_65 = arith.constant 1 : index
      %c0_66 = arith.constant 0 : index
      %108 = vector.load %arg5[%c0_63, %c0_64, %c1_65, %c0_66] : memref<1x1x3x128xf32, #tpu.memory_space<vmem>>, vector<1x1x1x128xf32>
      %109 = vector.shape_cast %108 : vector<1x1x1x128xf32> to vector<1x128xf32>
      %110 = vector.shape_cast %107 : vector<1x128xf32> to vector<1x1x1x128xf32>
      tpu.vector_store %arg5[%c0_63, %c0_64, %c1_65, %c0_66], %110 {strides = array<i32>} : memref<1x1x3x128xf32, #tpu.memory_space<vmem>>, vector<1x1x1x128xf32>,
      %c0_67 = arith.constant 0 : index
      %c0_68 = arith.constant 0 : index
      %111 = vector.load %arg8[%c0_67, %c0_68] : memref<1x128xf32, #tpu.memory_space<vmem>>, vector<1x128xf32>
      %c0_69 = arith.constant 0 : index
      %c0_70 = arith.constant 0 : index
      %c2_71 = arith.constant 2 : index
      %c0_72 = arith.constant 0 : index
      %112 = vector.load %arg5[%c0_69, %c0_70, %c2_71, %c0_72] : memref<1x1x3x128xf32, #tpu.memory_space<vmem>>, vector<1x1x1x128xf32>
      %113 = vector.shape_cast %112 : vector<1x1x1x128xf32> to vector<1x128xf32>
      %114 = vector.shape_cast %111 : vector<1x128xf32> to vector<1x1x1x128xf32>
      tpu.vector_store %arg5[%c0_69, %c0_70, %c2_71, %c0_72], %114 {strides = array<i32>} : memref<1x1x3x128xf32, #tpu.memory_space<vmem>>, vector<1x1x1x128xf32>,
    } else {
    }
    return
  }
  func.func @transform_0(%arg0: i32, %arg1: i32, %arg2: i32) -> (i32, i32, i32, i32) {
    %c1_i32 = arith.constant 1 : i32
    %0 = arith.muli %arg1, %c1_i32 : i32
    %1 = arith.addi %0, %arg2 : i32
    %c0_i32 = arith.constant 0 : i32
    %c0_i32_0 = arith.constant 0 : i32
    %c0_i32_1 = arith.constant 0 : i32
    return %arg0, %c0_i32, %1, %c0_i32_0 : i32, i32, i32, i32
  }
  func.func @transform_1(%arg0: i32, %arg1: i32, %arg2: i32) -> (i32, i32, i32) {
    %c1_i32 = arith.constant 1 : i32
    %0 = arith.muli %arg1, %c1_i32 : i32
    %1 = arith.addi %0, %arg2 : i32
    %c0_i32 = arith.constant 0 : i32
    %c0_i32_0 = arith.constant 0 : i32
    return %arg0, %1, %c0_i32 : i32, i32, i32
  }
  func.func @transform_2(%arg0: i32, %arg1: i32, %arg2: i32) -> (i32, i32, i32, i32) {
    %c0_i32 = arith.constant 0 : i32
    %c0_i32_0 = arith.constant 0 : i32
    %c0_i32_1 = arith.constant 0 : i32
    return %arg0, %arg1, %c0_i32, %c0_i32_0 : i32, i32, i32, i32
  }
}

</mosaic_0001>

<bundles_post_ra>
// kernel: tpu_custom_call.1
= control target key start
LH: loop header
LB: loop body
LE: loop exit
PB: predicated region body
PF: predicated region fallthrough
CT: control target
= control target key end

     0   :  { %7 = vsyncpa [#allocation6], 0  ;;  %s920_s0 = inlined_call_operand.hbm [shape: f32[2,4,4,128], index: 0, kind: input, shape index: {}]   ;;  %s921_s1 = inlined_call_operand.hbm [shape: s32[2,4,128], index: 1, kind: input, shape index: {}]   ;;  %s922_s2 = inlined_call_operand.vmem [shape: f32[2,1,3,128], index: 2, kind: output, shape index: {}]  }
   0x1   :  { %9 = vsyncpa [#allocation6 + $0x1], 0 }
   0x2   :  { %10 = vsyncpa [#allocation8], 0 }
   0x3   :  { %12 = vsyncpa [#allocation8 + $0x1], 0  ;;  %s700_s9 = smov 0   ;;  %s702_s10 = smov 0  }
   0x4   :  { %s704_s11 = smov 0   ;;  %s706_s12 = smov 0  }
   0x5   :  { %s708_s13 = smov 0   ;;  %s710_s14 = smov 0  }
   0x6 LB: > { %s468_s15 = sadd.s32 4294967295, %s678_s14   ;;  %s37_s16 = sadd.s32 1, %s674_s13  ;;  %s678_s14 = sphi %s710_s14, %s18_s14   ;;  %s674_s13 = sphi %s708_s13, %s934_s13   ;;  %s670_s12 = sphi %s706_s12, %s933_s12   ;;  %s666_s11 = sphi %s704_s11, %s932_s11   ;;  %s662_s10 = sphi %s702_s10, %s931_s10   ;;  %s658_s9 = sphi %s700_s9, %s930_s9  }
   0x7   : > { %p39_p0 = scmp.ge.s32.totalorder %s37_s16, 2  ;;  %s48_s17 = sadd.s32 1, %s666_s11 }
   0x8   : > { %p55_p1 = scmp.ne.s32.totalorder %s666_s11, %s662_s10  ;;  %p56_p2 = scmp.eq.s32.totalorder %s678_s14, 0 }
   0x9   : > { %s936_s16 = smov (%p39_p0, %s37_s16), 0  ;;  %p61_p4 = scmp.ne.s32.totalorder %s662_s10, %s658_s9 }
   0xa   : > { %p736_p3 = por %p56_p2, %p55_p1  ;;  %s43_s19 = ssub.s32 %s674_s13, %s936_s16 }
   0xb   : > { %p62_p5 = scmp.eq.s32.totalorder %s468_s15, 0  ;;  %p46_p6 = scmp.eq.s32.totalorder %s43_s19, 0 }
   0xc   : > { %p502_p8 = scmp.lt.s32.totalorder %s678_s14, 2  ;;  %s752_s22 = sand.u32 1, %s666_s11  }
   0xd   : > { %p743_p7 = por %p62_p5, %p61_p4  ;;  %s490_s23 = sshll.u32 %s674_s13, 8 }
   0xe   : > { %s749_s21 = scalar_select %p46_p6, %s666_s11, %s48_s17  }
   0xf   : > { %s925_s20 = scalar_select %p743_p7, 1, 0 }
  0x10   : > { %s472_s24 = sshll.u32 %s752_s22, 4  ;;  %s759_s27 = scalar_lea.hbm %s920_s0, %s490_s23 }
  0x11   : > { %s147_s28 = scalar_lea.vmem [#allocation5], %s472_s24  ;;  %p763_p9 = pnand %p502_p8, %p736_p3 }
  0x12   : > { %s156_s29 = sshll.u32 %s147_s28, 4  ;;  %s144_s3 = scalar_lea.sflag [#allocation6], %s752_s22  ;;  %s767_s29 = int_to_ptr.vmem [resolvable:$true] %s156_s29 }
  0x13   : > { %s564_s4 = scalar_lea.hbm %s759_s27, 256  ;;  %p566_p11 = pneg %p763_p9 }
  0x14   : > { %p565_p10 = scmp.ne.s32.totalorder %s759_s27, %s564_s4  ;;  %s569_s7 = scalar_lea.hbm %s920_s0, 512 }
  0x15   : > { %p570_p0 = scmp.lt.u32.totalorder %s759_s27, %s920_s0  ;;  %p571_p1 = scmp.lt.u32.totalorder %s569_s7, %s564_s4 }
  0x16   : > { %p567_p12 = pnand %p566_p11, %p565_p10  ;;  %p573_p3 = scmp.lt.u32.totalorder %s564_s4, %s759_s27 }
  0x17   : > { %p572_p2 = por %p571_p1, %p570_p0 }
  0x18   : > { %p568_p13 = pneg %p567_p12 }
  0x19   : > { %p574_p4 = por %p573_p3, %p572_p2 }
  0x1b   : > { %p575_p5 = pnand %p574_p4, %p568_p13 }
  0x1d   : > { %578 = shalt.err (!%p575_p5)
}
  0x1e   : > { %s579_s15 = scalar_lea.vmem %s767_s29, 256  ;;  %s680_s17 = smov [#allocation5]  }
  0x1f   : > { %p580_p6 = scmp.ne.s32.totalorder %s767_s29, %s579_s15  ;;  %s584_s18 = sshll.u32 %s680_s17, 4  ;;  %s585_s18 = int_to_ptr.vmem [resolvable:$false] %s584_s18 }
  0x20   : > { %s586_s19 = scalar_lea.vmem %s585_s18, 512  ;;  %p587_p12 = scmp.lt.s32.totalorder %s767_s29, %s585_s18 }
  0x21   : > { %p582_p8 = pnand %p580_p6, %p566_p11  ;;  %p588_p0 = scmp.lt.s32.totalorder %s586_s19, %s579_s15 }
  0x23   : > { %p583_p10 = pneg %p582_p8  ;;  %p589_p1 = por %p588_p0, %p587_p12 }
  0x25   : > { %p590_p2 = pnand %p589_p1, %p583_p10 }
  0x27   : > { %593 = shalt.err (!%p590_p2)
}
  0x28   : > { %s681_s23 = smov 64   ;;  %s682_s24 = smov 4  }
  0x29   : > { %498 = dma.hbm_to_vmem [thread:$0]  (!%p763_p9), %s759_s27, 256, %s767_s29, %s144_s3, %s681_s23, %s681_s23, %s682_s24  }
  0x2a   : > { %p477_p13 = scmp.ge.s32.totalorder %s678_s14, 1  ;;  %p184_p3 = scmp.lt.s32.totalorder %s678_s14, 3 }
  0x2b   : > { %s475_s25 = sshll.u32 %s752_s22, 2  ;;  %s476_s28 = sshll.u32 %s674_s13, 6 }
  0x2c   : > { %p800_p4 = pnand %p477_p13, %p184_p3  ;;  %s170_s4 = scalar_lea.vmem [#allocation7], %s475_s25 }
  0x2d   : > { %s179_s5 = sshll.u32 %s170_s4, 4  ;;  %s808_s8 = scalar_lea.hbm %s921_s1, %s476_s28  ;;  %s180_s5 = int_to_ptr.vmem [resolvable:$true] %s179_s5 }
  0x2e   : > { %s927_s26 = scalar_select %p800_p4, 1, 0 }
  0x2f   : > { %s167_s27 = scalar_lea.sflag [#allocation8], %s752_s22  ;;  %s594_s29 = scalar_lea.hbm %s808_s8, 64 }
  0x30   : > { %p595_p5 = scmp.ne.s32.totalorder %s808_s8, %s594_s29  ;;  %s599_s15 = scalar_lea.hbm %s921_s1, 128 }
  0x31   : > { %p600_p10 = scmp.lt.u32.totalorder %s808_s8, %s921_s1  ;;  %p601_p12 = scmp.lt.u32.totalorder %s599_s15, %s594_s29 }
  0x32   : > { %p597_p6 = pnand %p595_p5, %p566_p11  ;;  %p603_p1 = scmp.lt.u32.totalorder %s594_s29, %s808_s8 }
  0x33   : > { %p602_p0 = por %p601_p12, %p600_p10 }
  0x34   : > { %p598_p8 = pneg %p597_p6 }
  0x35   : > { %p604_p2 = por %p603_p1, %p602_p0 }
  0x37   : > { %p605_p13 = pnand %p604_p2, %p598_p8 }
  0x39   : > { %608 = shalt.err (!%p605_p13)
}
  0x3a   : > { %s609_s22 = scalar_lea.vmem %s180_s5, 64  ;;  %s683_s19 = smov [#allocation7]  }
  0x3b   : > { %p610_p3 = scmp.ne.s32.totalorder %s180_s5, %s609_s22  ;;  %s614_s23 = sshll.u32 %s683_s19, 4  ;;  %s615_s23 = int_to_ptr.vmem [resolvable:$false] %s614_s23 }
  0x3c   : > { %s616_s24 = scalar_lea.vmem %s615_s23, 128  ;;  %p617_p7 = scmp.lt.s32.totalorder %s180_s5, %s615_s23 }
  0x3d   : > { %p612_p5 = pnand %p610_p3, %p566_p11  ;;  %p618_p4 = scmp.lt.s32.totalorder %s616_s24, %s609_s22 }
  0x3f   : > { %p613_p6 = pneg %p612_p5  ;;  %p619_p10 = por %p618_p4, %p617_p7 }
  0x41   : > { %p620_p12 = pnand %p619_p10, %p613_p6 }
  0x43   : > { %623 = shalt.err (!%p620_p12)
}
  0x44   : > { %501 = dma.hbm_to_vmem [thread:$0]  (!%p763_p9), %s808_s8, 64, %s180_s5, %s167_s27  }
  0x45   : > { %p928_p8 = scmp.ne.s32.totalorder %s927_s26, 0 }
  0x46   : > { %s190_s25 = sand.u32 (!%p928_p8), 1, %s662_s10   ;;  %p929_p11 = scmp.ne.s32.totalorder (!%p928_p8), %s925_s20, 0 }
  0x47   : > { %188 = sbr.rel (%p928_p8) target bundleno = 153 (0x99), region = 28  ;;  %s478_s28 = sshll.u32 (!%p928_p8), %s190_s25, 4 }
  0x48   : > { %s191_s4 = scalar_lea.sflag (!%p928_p8), [#allocation6], %s190_s25  ;;  %s194_s6 = scalar_lea.vmem (!%p928_p8), [#allocation5], %s478_s28 }
  0x4e   : > { %649 = dma.done.wait (%p929_p11), %s191_s4, 256  }
  0x4f   : > { %651 = vsyncadd (%p929_p11), %s191_s4, 4294967040  ;;  %s479_s7 = sshll.u32 %s190_s25, 2  ;;  %s200_s29 = scalar_lea.sflag [#allocation8], %s190_s25 }
  0x50   : > { %s203_s30 = scalar_lea.vmem [#allocation7], %s479_s7 }
  0x51   : > { %653 = dma.done.wait (%p929_p11), %s200_s29, 64  }
  0x52   : > { %655 = vsyncadd (%p929_p11), %s200_s29, 4294967232  ;;  %v684_v0 = vmov 0.0   ;;  %v841_v1 = vld [vmem:[%s203_s30] sm:$0xf]  ;;  %v845_v3 = vld [vmem:[%s194_s6 + $0x4] sm:$0xf] }
  0x53   : > { %244 = vst [vmem:[#allocation2] sm:$0x1] %v684_v0  ;;  %245 = vst [vmem:[#allocation3] sm:$0x1] %v684_v0  ;;  %v843_v2 = vld [vmem:[%s194_s6] sm:$0xf] }
  0x54   : > { %246 = vst [vmem:[#allocation4] sm:$0x1] %v684_v0  ;;  %v251_v4 = vmax.f32 %v843_v2, %v845_v3  ;;  %v849_v5 = vld [vmem:[%s194_s6 + $0x8] sm:$0xf]  ;;  %v851_v6 = vld [vmem:[%s194_s6 + $0xc] sm:$0xf] }
  0x55   : > { %vm258_vm0 = vcmp.eq.s32.totalorder %v841_v1, 0  ;;  %vm271_vm1 = vcmp.eq.s32.totalorder %v841_v1, 1  ;;  %vm284_vm2 = vcmp.eq.s32.totalorder %v841_v1, 2  ;;  %vm259_vm3 = vcmp.gt.f32.partialorder %v843_v2, 0.5  ;;  %p233_p7 = scmp.lt.s32.totalorder %s670_s12, 1 }
  0x56   : > { %v254_v7 = vmax.f32 %v251_v4, %v849_v5  ;;  %vm272_vm4 = vcmp.gt.f32.partialorder %v845_v3, 0.5  ;;  %vm285_vm5 = vcmp.gt.f32.partialorder %v849_v5, 0.5  ;;  %vm298_vm6 = vcmp.gt.f32.partialorder %v851_v6, 0.5 }
  0x57   : > { %vm297_vm7 = vcmp.eq.s32.totalorder %v841_v1, 3  ;;  %v484_v9 = vsel %vm259_vm3, 1.0, %v684_v0  ;;  %v485_v10 = vsel %vm272_vm4, 1.0, %v684_v0  ;;  %v486_v13 = vsel %vm285_vm5, 1.0, %v684_v0  ;;  %s938_s12 = smov (!%p233_p7, %s670_s12), 1 }
  0x58   : > { %v862_v8 = vmax.f32 %v254_v7, %v851_v6  ;;  %v269_v11 = vsel %vm258_vm0, %v484_v9, 0.0  ;;  %v282_v12 = vsel %vm271_vm1, %v485_v10, 0.0  ;;  %v487_v14 = vsel %vm298_vm6, 1.0, %v684_v0  ;;  %s480_s20 = sshll.u32 %s938_s12, 2 }
  0x59   : > { %v283_v19 = vadd.f32 %v282_v12, %v269_v11  ;;  %v295_v20 = vsel %vm284_vm2, %v486_v13, 0.0  ;;  %v308_v21 = vsel %vm297_vm7, %v487_v14, 0.0  ;;  %v281_v25 = vadd.f32 %v485_v10, %v484_v9  ;;  %s239_s8 = scalar_lea.vmem %s922_s2, %s480_s20 }
  0x5a   : > { %v262_v15 = vsub.f32 %v843_v2, %v862_v8  ;;  %v275_v16 = vsub.f32 %v845_v3, %v862_v8  ;;  %v288_v17 = vsub.f32 %v849_v5, %v862_v8  ;;  %v301_v18 = vsub.f32 %v851_v6, %v862_v8  ;;  %v325_v47 = vld [vmem:[#allocation3] sm:$0x1] }
  0x5b   : > { %v296_v27 = vadd.f32 %v295_v20, %v283_v19  ;;  %vm315_vm8 = vcmask 1043456   ;;  %v294_v28 = vadd.f32 %v486_v13, %v281_v25  ;;  %v335_v51 = vld [vmem:[#allocation4] sm:$0x1]  ;;  %v266_v56 = vsel %vm258_vm0, %v843_v2, 0.0 }
  0x5c   : > { %v263_v22 = vmul.f32 1.442695, %v262_v15  ;;  %v276_v23 = vmul.f32 1.442695, %v275_v16  ;;  %v289_v24 = vmul.f32 1.442695, %v288_v17 }
  0x5d   : > { %v302_v26 = vmul.f32 1.442695, %v301_v18  ;;  %v309_v29 = vadd.f32 %v308_v21, %v296_v27  ;;  %v307_v30 = vadd.f32 %v487_v14, %v294_v28  ;;  %v279_v57 = vsel %vm271_vm1, %v845_v3, 0.0  ;;  %v314_v14 = vld [vmem:[#allocation2] sm:$0x1] }
  0x5e   : > { %554 = vpow2.f32 %v263_v22  ;;  %v280_v58 = vadd.f32 %v279_v57, %v266_v56  ;;  %v292_v59 = vsel %vm284_vm2, %v849_v5, 0.0  ;;  %v305_v62 = vsel %vm297_vm7, %v851_v6, 0.0 }
  0x5f   : > { %556 = vpow2.f32 %v276_v23  ;;  %v326_v31 = vsel %vm315_vm8, %v309_v29, 0.0  ;;  %v336_v33 = vsel %vm315_vm8, %v307_v30, 0.0 }
  0x60   : > { %558 = vpow2.f32 %v289_v24  ;;  %v327_v32 = vrot.slane %v326_v31, 4  ;;  %v337_v34 = vrot.slane %v336_v33, 4  ;;  %v293_v60 = vadd.f32 %v292_v59, %v280_v58 }
  0x61   : > { %560 = vpow2.f32 %v302_v26 }
  0x62   : > { %v328_v35 = vadd.f32 %v327_v32, %v326_v31  ;;  %v338_v36 = vadd.f32 %v337_v34, %v336_v33  ;;  %v306_v2 = vadd.f32 %v305_v62, %v293_v60 }
  0x64   : > { %v329_v37 = vrot.slane %v328_v35, 2  ;;  %v339_v38 = vrot.slane %v338_v36, 2 }
  0x66   : > { %v330_v40 = vadd.f32 %v329_v37, %v328_v35  ;;  %v340_v42 = vadd.f32 %v339_v38, %v338_v36 }
  0x68   : > { %v555_v39 = vpop.eup %554  ;;  %v331_v45 = vrot.slane %v330_v40, 1  ;;  %v341_v48 = vrot.slane %v340_v42, 1 }
  0x69   : > { %v557_v41 = vpop.eup %556 }
  0x6a   : > { %v559_v43 = vpop.eup %558  ;;  %v278_v44 = vadd.f32 %v557_v41, %v555_v39  ;;  %v332_v50 = vadd.f32 %v331_v45, %v330_v40  ;;  %v342_v52 = vadd.f32 %v341_v48, %v340_v42 }
  0x6b   : > { %v561_v46 = vpop.eup %560 }
  0x6c   : > { %v291_v49 = vadd.f32 %v559_v43, %v278_v44  ;;  %v333_v54 = vadd.f32 %v332_v50, %v325_v47  ;;  %v343_v55 = vadd.f32 %v342_v52, %v335_v51 }
  0x6e   : > { %v304_v53 = vadd.f32 %v561_v46, %v291_v49  ;;  %334 = vst [vmem:[#allocation3] sm:$0x1] %v333_v54  ;;  %344 = vst [vmem:[#allocation4] sm:$0x1] %v343_v55 }
  0x70   : > { %562 = vlog2.f32 %v304_v53 }
  0x75   : > { %v350_v61 = vld [vmem:[#allocation3] sm:$0x1]  ;;  %v352_v63 = vld [vmem:[#allocation4] sm:$0x1] }
  0x76   : > { %351 = vst [vmem:[%s239_s8 + $0x1] sm:$0x1] %v350_v61  ;;  %353 = vst [vmem:[%s239_s8 + $0x2] sm:$0x1] %v352_v63 }
  0x7a   : > { %v563_v0 = vpop.eup %562 }
  0x7b   : > { %v311_v3 = vmul.f32 0.6931472, %v563_v0 }
  0x7d   : > { %v312_v4 = vadd.f32 %v311_v3, %v862_v8 }
  0x7f   : > { %v313_v7 = vsub.f32 %v312_v4, %v306_v2 }
  0x81   : > { %v316_v5 = vsel %vm315_vm8, %v313_v7, 0.0 }
  0x82   : > { %v317_v9 = vrot.slane %v316_v5, 4 }
  0x84   : > { %v318_v10 = vadd.f32 %v317_v9, %v316_v5 }
  0x86   : > { %v319_v11 = vrot.slane %v318_v10, 2 }
  0x88   : > { %v320_v12 = vadd.f32 %v319_v11, %v318_v10 }
  0x8a   : > { %v321_v13 = vrot.slane %v320_v12, 1 }
  0x8c   : > { %v322_v15 = vadd.f32 %v321_v13, %v320_v12 }
  0x8e   : > { %v323_v1 = vadd.f32 %v322_v15, %v314_v14 }
  0x90   : > { %324 = vst [vmem:[#allocation2] sm:$0x1] %v323_v1 }
  0x97   : > { %v348_v6 = vld [vmem:[#allocation2] sm:$0x1] }
  0x98   : > { %349 = vst [vmem:[%s239_s8] sm:$0x1] %v348_v6 }
  0x99 PF: > { %s18_s14 = sadd.s32 1, %s678_s14   ;;  %s930_s9 = smov %s662_s10 }
  0x9a   : > { %p15_p9 = scmp.ge.s32.totalorder %s18_s14, 4   ;;  %s931_s10 = smov %s666_s11 }
  0x9b   : > { %s932_s11 = smov %s749_s21  ;;  %s933_s12 = smov %s674_s13 }
  0x9c   : > { %s934_s13 = smov %s936_s16  ;;  %17 = sbr.rel (!%p15_p9) target bundleno = 6 (0x6), region = 92 }
  0xa3   :  { %379 = vsyncpa [#allocation6], 1 }
  0xa4   :  { %381 = vsyncpa [#allocation6 + $0x1], 1 }
  0xa5   :  { %382 = vsyncpa [#allocation8], 1 }
  0xa6   :  { %384 = vsyncpa [#allocation8 + $0x1], 1 }

</bundles_post_ra>
